<compile_context>
chip_gen: v7x
topology: tpu7x:2x2x1
jax: 0.10.0
libtpu: 0.0.40
codegen_flags: <defaults>
</compile_context>

<pallas_src>
import jax
import jax.numpy as jnp
from jax.experimental import pallas as pl
from jax.experimental.pallas import tpu as pltpu

INPUT_SIZE = 100
HIDDEN_SIZE = 128
EMBEDDING_SIZE = 64


def _round_up(n, m):
    return ((n + m - 1) // m) * m


def _mlp_encoder_kernel(x_ref, w1_ref, b1_ref, w2_ref, b2_ref, o_ref):
    """Fused Linear -> ReLU -> Linear on one (TM, K) batch tile."""
    x = x_ref[...]                                              # (TM, K)
    h = jnp.dot(x, w1_ref[...],
                preferred_element_type=jnp.float32)             # f32 accum
    h = jnp.maximum(h + b1_ref[...], 0.0)                       # bias+ReLU f32
    y = jnp.dot(h.astype(w2_ref.dtype), w2_ref[...],
                preferred_element_type=jnp.float32)             # f32 accum
    o_ref[...] = (y + b2_ref[...]).astype(o_ref.dtype)


def matching_network_forward(x, w1, b1, w2, b2, *, block_m=2048):
    """MatchingNetwork.forward: flatten -> Linear -> ReLU -> Linear.

    x:  (B, ...) arbitrary trailing dims, flattened to (B, input_size).
    w1: (input_size, hidden)   b1: (hidden,) or (1, hidden)
    w2: (hidden, embedding)    b2: (embedding,) or (1, embedding)

    x is streamed in whatever dtype it arrives in (no wrapper cast/pad pass);
    accumulation, biases and the ReLU are f32; output is f32.
    """
    B = x.shape[0]
    x2d = x.reshape(B, -1)
    in_features = x2d.shape[1]
    assert in_features == w1.shape[0], (in_features, w1.shape)
    hidden = w1.shape[1]
    emb = w2.shape[1]
    assert w2.shape[0] == hidden

    # --- Batch tiling: tm rows per grid step (multiple of 8). Ragged last
    # tile is handled by Pallas (OOB output rows are dropped), so no batch
    # padding pass over x is needed.
    tm = min(block_m, _round_up(B, 8))
    # Keep >= 2 grid steps when the batch is big enough to split, so the
    # "parallel" batch axis can shard across both TensorCores (v7x megacore).
    if B > 16 and tm >= _round_up(B, 8):
        tm = _round_up((B + 1) // 2, 8)
    tm = max(8, _round_up(tm, 8))
    grid = (pl.cdiv(B, tm),)

    # --- dtypes: stream x as-is; weights (tiny, VMEM-resident) follow x's
    # dtype; biases stay f32 so the bias+ReLU epilogue is exact.
    compute_dtype = x2d.dtype
    w1c = w1.astype(compute_dtype)
    w2c = w2.astype(compute_dtype)
    b1f = jnp.asarray(b1, jnp.float32).reshape(1, hidden)
    b2f = jnp.asarray(b2, jnp.float32).reshape(1, emb)

    x_bytes = jnp.dtype(compute_dtype).itemsize
    cost = pl.CostEstimate(
        flops=2 * B * (in_features * hidden + hidden * emb),
        transcendentals=0,
        bytes_accessed=int(B * in_features * x_bytes                  # x read
                           + (in_features * hidden + hidden * emb) * x_bytes
                           + (hidden + emb) * 4                        # biases
                           + B * emb * 4),                             # y write
    )

    out = pl.pallas_call(
        _mlp_encoder_kernel,
        out_shape=jax.ShapeDtypeStruct((B, emb), jnp.float32),
        grid_spec=pltpu.PrefetchScalarGridSpec(
            num_scalar_prefetch=0,
            grid=grid,
            in_specs=[
                # x: streams one batch tile per step; feature dim full-extent.
                pl.BlockSpec((tm, in_features), lambda i: (i, 0)),
                # Weights / biases: constant index_map -> VMEM-resident.
                pl.BlockSpec((in_features, hidden), lambda i: (0, 0)),
                pl.BlockSpec((1, hidden), lambda i: (0, 0)),
                pl.BlockSpec((hidden, emb), lambda i: (0, 0)),
                pl.BlockSpec((1, emb), lambda i: (0, 0)),
            ],
            # Output written unpadded: (tm, emb) full-extent on the lane dim.
            out_specs=pl.BlockSpec((tm, emb), lambda i: (i, 0)),
        ),
        compiler_params=pltpu.CompilerParams(
            dimension_semantics=("parallel",),   # megacore sharding on v7x
        ),
        cost_estimate=cost,
    )(x2d, w1c, b1f, w2c, b2f)

    return out


def init_params(key, input_size=INPUT_SIZE, hidden=HIDDEN_SIZE,
                emb=EMBEDDING_SIZE):
    """Deterministic init matching PyTorch nn.Linear default:
    U(-1/sqrt(fan_in), 1/sqrt(fan_in)). Weights stored as (in, out),
    biases as 1D like PyTorch."""
    k1, k2, k3, k4 = jax.random.split(key, 4)
    bound1 = 1.0 / jnp.sqrt(input_size)
    bound2 = 1.0 / jnp.sqrt(hidden)
    w1 = jax.random.uniform(k1, (input_size, hidden), jnp.float32,
                            -bound1, bound1)
    b1 = jax.random.uniform(k2, (hidden,), jnp.float32, -bound1, bound1)
    w2 = jax.random.uniform(k3, (hidden, emb), jnp.float32, -bound2, bound2)
    b2 = jax.random.uniform(k4, (emb,), jnp.float32, -bound2, bound2)
    return w1, b1, w2, b2


if __name__ == "__main__":
    key = jax.random.PRNGKey(0)
    pkey, xkey = jax.random.split(key)

    w1, b1, w2, b2 = init_params(pkey)

    # Small example input consistent with forward(): (batch, input_size).
    B = 40
    x = jax.random.normal(xkey, (B, INPUT_SIZE), dtype=jnp.float32)

    # Plain-JAX reference.
    ref = jnp.maximum(x @ w1 + b1[None, :], 0.0) @ w2 + b2[None, :]

    # Default tiling (tm capped so the grid keeps >= 2 steps).
    out = matching_network_forward(x, w1, b1, w2, b2)
    out = jax.block_until_ready(out)
    assert out.shape == (B, EMBEDDING_SIZE)
    assert jnp.allclose(out, ref, atol=1e-5, rtol=1e-5)

    # Small tile to exercise several grid steps + the ragged last tile
    # (40 rows with tm=16 -> grid of 3, last tile 8 rows).
    out_small = matching_network_forward(x, w1, b1, w2, b2, block_m=16)
    out_small = jax.block_until_ready(out_small)
    assert out_small.shape == (B, EMBEDDING_SIZE)
    assert jnp.allclose(out_small, ref, atol=1e-5, rtol=1e-5)

    # bf16 path: only meaningful when x *already* arrives in bf16 (the kernel
    # streams x.dtype; the wrapper never inserts a cast pass). f32 accum.
    out_bf16 = matching_network_forward(x.astype(jnp.bfloat16), w1, b1, w2, b2)
    out_bf16 = jax.block_until_ready(out_bf16)
    assert out_bf16.shape == (B, EMBEDDING_SIZE)
    assert jnp.allclose(out_bf16, ref, atol=3e-2, rtol=3e-2)

    # TODO(synk): attention() and full_context_embedding() (bi-LSTM) are not
    # part of forward(); not implemented here.
    print("KERNEL_OK")
</pallas_src>

<mosaic_0001>
module attributes {stable_mosaic.version = 11 : i64} {
  func.func @_mlp_encoder_kernel(%arg0: i32, %arg1: memref<24x100xf32, #tpu.memory_space<vmem>>, %arg2: memref<100x128xf32, #tpu.memory_space<vmem>>, %arg3: memref<1x128xf32, #tpu.memory_space<vmem>>, %arg4: memref<128x64xf32, #tpu.memory_space<vmem>>, %arg5: memref<1x64xf32, #tpu.memory_space<vmem>>, %arg6: memref<24x64xf32, #tpu.memory_space<vmem>>) attributes {dimension_semantics = [#tpu.dimension_semantics<parallel>], iteration_bounds = array<i64: 2>, scalar_prefetch = 0 : i64, scratch_operands = 0 : i64, tpu.core_type = #tpu.core_type<tc>, window_params = [{transform_indices = @transform_0, window_bounds = array<i64: 24, 100>}, {pipeline_mode = #tpu.pipeline_mode<synchronous>, transform_indices = @transform_1, window_bounds = array<i64: 100, 128>}, {pipeline_mode = #tpu.pipeline_mode<synchronous>, transform_indices = @transform_2, window_bounds = array<i64: 1, 128>}, {pipeline_mode = #tpu.pipeline_mode<synchronous>, transform_indices = @transform_3, window_bounds = array<i64: 128, 64>}, {pipeline_mode = #tpu.pipeline_mode<synchronous>, transform_indices = @transform_4, window_bounds = array<i64: 1, 64>}, {transform_indices = @transform_5, window_bounds = array<i64: 24, 64>}]} {
    %c0 = arith.constant 0 : index
    %c0_0 = arith.constant 0 : index
    %0 = vector.load %arg1[%c0, %c0_0] : memref<24x100xf32, #tpu.memory_space<vmem>>, vector<24x100xf32>
    %c0_1 = arith.constant 0 : index
    %c0_2 = arith.constant 0 : index
    %1 = vector.load %arg2[%c0_1, %c0_2] : memref<100x128xf32, #tpu.memory_space<vmem>>, vector<100x128xf32>
    %cst = arith.constant dense<0.000000e+00> : vector<24x128xf32>
    %2 = tpu.matmul %0, %1, %cst {dimension_numbers = #tpu.dot_dimension_numbers<[1], [0], [0], [1], [0, 0, 1, 1], [], []>} : vector<24x100xf32>, vector<100x128xf32>, vector<24x128xf32> -> vector<24x128xf32>
    %c0_3 = arith.constant 0 : index
    %c0_4 = arith.constant 0 : index
    %3 = vector.load %arg3[%c0_3, %c0_4] : memref<1x128xf32, #tpu.memory_space<vmem>>, vector<1x128xf32>
    %4 = vector.broadcast %3 : vector<1x128xf32> to vector<24x128xf32>
    %5 = arith.addf %2, %4 : vector<24x128xf32>
    %cst_5 = arith.constant 0.000000e+00 : f32
    %6 = vector.broadcast %cst_5 : f32 to vector<24x128xf32>
    %7 = arith.maximumf %5, %6 : vector<24x128xf32>
    %c0_6 = arith.constant 0 : index
    %c0_7 = arith.constant 0 : index
    %8 = vector.load %arg4[%c0_6, %c0_7] : memref<128x64xf32, #tpu.memory_space<vmem>>, vector<128x64xf32>
    %cst_8 = arith.constant dense<0.000000e+00> : vector<24x64xf32>
    %9 = tpu.matmul %7, %8, %cst_8 {dimension_numbers = #tpu.dot_dimension_numbers<[1], [0], [0], [1], [0, 0, 1, 1], [], []>} : vector<24x128xf32>, vector<128x64xf32>, vector<24x64xf32> -> vector<24x64xf32>
    %c0_9 = arith.constant 0 : index
    %c0_10 = arith.constant 0 : index
    %10 = vector.load %arg5[%c0_9, %c0_10] : memref<1x64xf32, #tpu.memory_space<vmem>>, vector<1x64xf32>
    %11 = vector.broadcast %10 : vector<1x64xf32> to vector<24x64xf32>
    %12 = arith.addf %9, %11 : vector<24x64xf32>
    %c0_11 = arith.constant 0 : index
    %c0_12 = arith.constant 0 : index
    %13 = vector.load %arg6[%c0_11, %c0_12] : memref<24x64xf32, #tpu.memory_space<vmem>>, vector<24x64xf32>
    tpu.vector_store %arg6[%c0_11, %c0_12], %12 {strides = array<i32>} : memref<24x64xf32, #tpu.memory_space<vmem>>, vector<24x64xf32>,
    return
  }
  func.func @transform_0(%arg0: i32) -> (i32, i32) {
    %c0_i32 = arith.constant 0 : i32
    %c0_i32_0 = arith.constant 0 : i32
    return %arg0, %c0_i32 : i32, i32
  }
  func.func @transform_1(%arg0: i32) -> (i32, i32) {
    %c0_i32 = arith.constant 0 : i32
    %c0_i32_0 = arith.constant 0 : i32
    %c0_i32_1 = arith.constant 0 : i32
    return %c0_i32, %c0_i32_0 : i32, i32
  }
  func.func @transform_2(%arg0: i32) -> (i32, i32) {
    %c0_i32 = arith.constant 0 : i32
    %c0_i32_0 = arith.constant 0 : i32
    %c0_i32_1 = arith.constant 0 : i32
    return %c0_i32, %c0_i32_0 : i32, i32
  }
  func.func @transform_3(%arg0: i32) -> (i32, i32) {
    %c0_i32 = arith.constant 0 : i32
    %c0_i32_0 = arith.constant 0 : i32
    %c0_i32_1 = arith.constant 0 : i32
    return %c0_i32, %c0_i32_0 : i32, i32
  }
  func.func @transform_4(%arg0: i32) -> (i32, i32) {
    %c0_i32 = arith.constant 0 : i32
    %c0_i32_0 = arith.constant 0 : i32
    %c0_i32_1 = arith.constant 0 : i32
    return %c0_i32, %c0_i32_0 : i32, i32
  }
  func.func @transform_5(%arg0: i32) -> (i32, i32) {
    %c0_i32 = arith.constant 0 : i32
    %c0_i32_0 = arith.constant 0 : i32
    return %arg0, %c0_i32 : i32, i32
  }
}

</mosaic_0001>

<bundles_post_ra>
// kernel: tpu_custom_call.1
= control target key start
LH: loop header
LB: loop body
LE: loop exit
PB: predicated region body
PF: predicated region fallthrough
CT: control target
= control target key end

     0   :  { %10 = vsyncpa [#allocation3], 0  ;;  %s1112_s0 = inlined_call_operand.vmem [shape: f32[40,100], index: 0, kind: input, shape index: {}]   ;;  %s1113_s1 = inlined_call_operand.vmem [shape: f32[100,128], index: 1, kind: input, shape index: {}]   ;;  %s1114_s2 = inlined_call_operand.vmem [shape: f32[1,128], index: 2, kind: input, shape index: {}]   ;;  %s1115_s3 = inlined_call_operand.vmem [shape: f32[128,64], index: 3, kind: input, shape index: {}]   ;;  %s1116_s4 = inlined_call_operand.vmem [shape: f32[1,64], index: 4, kind: input, shape index: {}]   ;;  %s1117_s5 = inlined_call_operand.hbm [shape: f32[40,64], index: 5, kind: output, shape index: {}]  }
   0x1   :  { %12 = vsyncpa [#allocation3 + $0x1], 0  ;;  %s875_s18 = smov 0   ;;  %s877_s19 = smov 0  }
   0x2   :  { %s879_s20 = smov 0   ;;  %s881_s21 = smov 0  }
   0x3 LB: > { %s896_s22 = sadd.s32 4294967295, %s837_s21   ;;  %s559_s23 = sadd.s32 4294967294, %s837_s21   ;;  %s837_s21 = sphi %s881_s21, %s1123_s21   ;;  %s833_s20 = sphi %s879_s20, %s1122_s20   ;;  %s829_s19 = sphi %s877_s19, %s1121_s19   ;;  %s825_s18 = sphi %s875_s18, %s1120_s18  }
   0x4   : > { %s900_s24 = sadd.s32 1, %s837_s21   ;;  %s135_s25 = sadd.s32 1, %s833_s20 }
   0x5   : > { %s132_s26 = ssub.s32 %s837_s21, %s900_s24  ;;  %p145_p0 = scmp.ne.s32.totalorder %s833_s20, %s829_s19 }
   0x6   : > { %p133_p1 = scmp.eq.s32.totalorder %s132_s26, 0  ;;  %p146_p2 = scmp.eq.s32.totalorder %s896_s22, 1 }
   0x7   : > { %p151_p3 = scmp.ne.s32.totalorder %s829_s19, %s825_s18  ;;  %p152_p4 = scmp.eq.s32.totalorder %s559_s23, 1 }
   0x8   : > { %s911_s27 = scalar_select %p133_p1, %s833_s20, %s135_s25  }
   0x9   : > { %p913_p5 = por %p146_p2, %p145_p0  ;;  %p917_p6 = por %p152_p4, %p151_p3 }
   0xa   : > { %p562_p7 = scmp.ge.s32.totalorder %s837_s21, 1  ;;  %p199_p8 = scmp.lt.s32.totalorder %s837_s21, 3 }
   0xc   : > { %p200_p9 = pnand %p562_p7, %p199_p8 }
   0xd   : > { %v253_v0 = vld [vmem:[%s1113_s1] sm:$0xff] (!%p200_p9)  ;;  %v254_v1 = vld [vmem:[%s1113_s1 + $0x8] sm:$0xff] (!%p200_p9)  ;;  %v255_v2 = vld [vmem:[%s1113_s1 + $0x10] sm:$0xff] (!%p200_p9)  ;;  %v839_v3 = vmov (!%p200_p9), 0.0|0.0   ;;  %vm840_vm0 = vmmov (!%p200_p9), 0   ;;  %v841_v6 = vmov (!%p200_p9), 0.0  }
   0xe   : > { %203 = sbr.rel (%p200_p9) target bundleno = 508 (0x1fc), region = 40  ;;  %689 = vmatprep.subr.bf16.mxu0 (!%p200_p9), %v839_v3  ;;  %v690_v4 = vpack.c.bf16 (!%p200_p9), %v254_v1, %v253_v0  ;;  %v256_v5 = vld [vmem:[%s1113_s1 + $0x18] sm:$0xff] (!%p200_p9)  ;;  %707 = vmatprep.subr.bf16.mxu1 (!%p200_p9), %v839_v3  ;;  %v257_v8 = vld [vmem:[%s1113_s1 + $0x20] sm:$0xff] (!%p200_p9)  ;;  %v258_v9 = vld [vmem:[%s1113_s1 + $0x28] sm:$0xff] (!%p200_p9)  ;;  %vm283_vm1 = vcmask (!%p200_p9), 1043456   ;;  %vm273_vm2 = vcmask (!%p200_p9), 818176  }
   0xf   : > { %639 = vmatprep.mubr.msk.f32.mxu0 (!%p200_p9), %vm840_vm0, %v841_v6  ;;  %680 = vmatprep.mubr.msk.f32.mxu1 (!%p200_p9), %vm840_vm0, %v841_v6  ;;  %v693_v7 = vpack.c.bf16 (!%p200_p9), %v256_v5, %v255_v2  ;;  %v370_v10 = vld [vmem:[%s1115_s3] sm:$0xff] (!%p200_p9)  ;;  %v371_v11 = vld [vmem:[%s1115_s3 + $0x8] sm:$0xff] (!%p200_p9)  ;;  %v372_v13 = vld [vmem:[%s1115_s3 + $0x10] sm:$0xff] (!%p200_p9)  ;;  %v696_v15 = vpack.c.bf16 (!%p200_p9), %v258_v9, %v257_v8  ;;  %s964_s11 = smul.u32 (!%p200_p9), 3, %s896_s22  ;;  %s228_s9 = sand.u32 (!%p200_p9), 1, %s829_s19   ;;  %vm473_vm3 = vcmask (!%p200_p9), 523264  }
  0x10   : > { %691 = vmatpush3.bf16.msra.mxu0 (!%p200_p9), %v690_v4  ;;  %v708_v12 = vpack.c.bf16 (!%p200_p9), %v371_v11, %v370_v10  ;;  %v373_v14 = vld [vmem:[%s1115_s3 + $0x18] sm:$0xff] (!%p200_p9)  ;;  %v259_v16 = vld [vmem:[%s1113_s1 + $0x30] sm:$0xff] (!%p200_p9)  ;;  %v374_v19 = vld [vmem:[%s1115_s3 + $0x20] sm:$0xff] (!%p200_p9)  ;;  %s731_s10 = smul.u32 (!%p200_p9), 24, %s228_s9  ;;  %s1052_s15 = scalar_lea.sflag (!%p200_p9), [#allocation3], %s228_s9 }
  0x11   : > { %692 = vmatprep.subr.bf16.mxu0 (!%p200_p9), %v839_v3  ;;  %v711_v17 = vpack.c.bf16 (!%p200_p9), %v373_v14, %v372_v13  ;;  %v260_v18 = vld [vmem:[%s1113_s1 + $0x38] sm:$0xff] (!%p200_p9)  ;;  %v375_v20 = vld [vmem:[%s1115_s3 + $0x28] sm:$0xff] (!%p200_p9)  ;;  %v261_v22 = vld [vmem:[%s1113_s1 + $0x40] sm:$0xff] (!%p200_p9)  ;;  %p236_p10 = scmp.lt.s32.totalorder (!%p200_p9), %s964_s11, 4 }
  0x12   : > { %709 = vmatpush3.bf16.msra.mxu1 (!%p200_p9), %v708_v12  ;;  %v699_v21 = vpack.c.bf16 (!%p200_p9), %v260_v18, %v259_v16  ;;  %v714_v23 = vpack.c.bf16 (!%p200_p9), %v375_v20, %v374_v19  ;;  %v262_v24 = vld [vmem:[%s1113_s1 + $0x48] sm:$0xff] (!%p200_p9)  ;;  %v376_v25 = vld [vmem:[%s1115_s3 + $0x30] sm:$0xff] (!%p200_p9)  ;;  %v377_v26 = vld [vmem:[%s1115_s3 + $0x38] sm:$0xff] (!%p200_p9)  ;;  %s230_s14 = scalar_lea.vmem (!%p200_p9), [#allocation2], %s731_s10 }
  0x13   : > { %710 = vmatprep.subr.bf16.mxu1 (!%p200_p9), %v839_v3  ;;  %v702_v27 = vpack.c.bf16 (!%p200_p9), %v262_v24, %v261_v22  ;;  %v263_v28 = vld [vmem:[%s1113_s1 + $0x50] sm:$0xff] (!%p200_p9)  ;;  %v717_v29 = vpack.c.bf16 (!%p200_p9), %v377_v26, %v376_v25  ;;  %v264_v30 = vld [vmem:[%s1113_s1 + $0x58] sm:$0xff] (!%p200_p9)  ;;  %v378_v31 = vld [vmem:[%s1115_s3 + $0x40] sm:$0xff] (!%p200_p9) }
  0x14   : > { %694 = vmatpush3.bf16.msra.mxu0 (!%p200_p9), %v693_v7  ;;  %v379_v32 = vld [vmem:[%s1115_s3 + $0x48] sm:$0xff] (!%p200_p9)  ;;  %v705_v33 = vpack.c.bf16 (!%p200_p9), %v264_v30, %v263_v28  ;;  %v380_v35 = vld [vmem:[%s1115_s3 + $0x50] sm:$0xff] (!%p200_p9)  ;;  %v381_v36 = vld [vmem:[%s1115_s3 + $0x58] sm:$0xff] (!%p200_p9) }
  0x15   : > { %695 = vmatprep.subr.bf16.mxu0 %v839_v3  ;;  %s237_s13 = scalar_select %p236_p10, %s964_s11, 4  ;;  %v720_v34 = vpack.c.bf16 %v379_v32, %v378_v31  ;;  %v723_v37 = vpack.c.bf16 %v381_v36, %v380_v35  ;;  %v265_v38 = vld [vmem:[%s1113_s1 + $0x60] sm:$0xf]  ;;  %v383_v40 = vld [vmem:[%s1115_s3 + $0x68] sm:$0xff]  ;;  %v384_v45 = vld [vmem:[%s1115_s3 + $0x70] sm:$0xff] }
  0x16   : > { %712 = vmatpush3.bf16.msra.mxu1 %v711_v17  ;;  %v382_v39 = vld [vmem:[%s1115_s3 + $0x60] sm:$0xff]  ;;  %v385_v46 = vld [vmem:[%s1115_s3 + $0x78] sm:$0xff]  ;;  %s486_s16 = ssub.s32 (%p913_p5), 5, %s964_s11 }
  0x17   : > { %713 = vmatprep.subr.bf16.mxu1 %v839_v3  ;;  %s563_s26 = sshll.u32 %s237_s13, 3  ;;  %v726_v42 = vpack.c.bf16 %v383_v40, %v382_v39  ;;  %v729_v47 = vpack.c.bf16 %v385_v46, %v384_v45  ;;  %v564_v48 = vld [vmem:[%s1114_s2] ss:$0 sm:$0xff]  ;;  %p487_p11 = scmp.lt.s32.totalorder (%p913_p5), %s486_s16, 3 }
  0x18   : > { %697 = vmatpush3.bf16.msra.mxu0 %v696_v15  ;;  %s239_s12 = scalar_lea.vmem %s1112_s0, %s563_s26  ;;  %v569_v61 = vld [vmem:[%s1116_s4] ss:$0 sm:$0xff] }
  0x19   : > { %698 = vmatprep.subr.bf16.mxu0 %v839_v3  ;;  %v250_v41 = vld [vmem:[%s239_s12] sm:$0xff]  ;;  %v251_v43 = vld [vmem:[%s239_s12 + $0x8] sm:$0xff]  ;;  %v252_v44 = vld [vmem:[%s239_s12 + $0x10] sm:$0xff] }
  0x1a   : > { %715 = vmatpush3.bf16.msra.mxu1 %v714_v23 }
  0x1b   : > { %716 = vmatprep.subr.bf16.mxu1 %v839_v3 }
  0x1c   : > { %700 = vmatpush3.bf16.msra.mxu0 %v699_v21 }
  0x1d   : > { %701 = vmatprep.subr.bf16.mxu0 %v839_v3 }
  0x1e   : > { %718 = vmatpush3.bf16.msra.mxu1 %v717_v29 }
  0x1f   : > { %719 = vmatprep.subr.bf16.mxu1 %v839_v3 }
  0x20   : > { %703 = vmatpush3.bf16.msra.mxu0 %v702_v27 }
  0x21   : > { %704 = vmatprep.subr.bf16.mxu0 %v839_v3 }
  0x22   : > { %721 = vmatpush3.bf16.msra.mxu1 %v720_v34 }
  0x23   : > { %722 = vmatprep.subr.bf16.mxu1 %v839_v3 }
  0x24   : > { %706 = vmatpush3.bf16.msra.mxu0 %v705_v33 }
  0x25   : > { %637 = vmatprep.subr.mxu0 %v841_v6 }
  0x26   : > { %724 = vmatpush3.bf16.msra.mxu1 %v723_v37 }
  0x27   : > { %725 = vmatprep.subr.bf16.mxu1 %v839_v3 }
  0x28   : > { %638 = vmatpush3.msk.msra.mxu0 %vm283_vm1, %v265_v38 }
  0x29   : > { %640 = vmatmul.mubr.msk.f32.vlgmr.msra.gmra.mrb[0].mxu0 %vm273_vm2, %v250_v41 }
  0x2a   : > { %642 = vmatprep.mubr.msk.f32.mxu0 %vm840_vm0, %v841_v6  ;;  %727 = vmatpush3.bf16.msra.mxu1 %v726_v42 }
  0x2b   : > { %728 = vmatprep.subr.bf16.mxu1 %v839_v3 }
  0x2d   : > { %643 = vmatmul.mubr.msk.f32.gmra.mrb[2].mxu0 %vm273_vm2, %v251_v43 }
  0x2e   : > { %645 = vmatprep.mubr.msk.f32.mxu0 %vm840_vm0, %v841_v6  ;;  %730 = vmatpush3.bf16.msra.mxu1 %v729_v47 }
  0x31   : > { %646 = vmatmul.mubr.msk.f32.gmra.mrb[4].mxu0 %vm273_vm2, %v252_v44 }
  0xfc   : > { %v353_v49 = vpop.f32.mrb[0].mxu0 }
  0xfd   : > { %v354_v50 = vadd.f32 %v564_v48, %v353_v49  ;;  %v641_v51 = vpop.f32.mrb[1].mxu0 }
  0xff   : > { %v367_v52 = vmax.f32 %v354_v50, 0.0 }
 0x100   : > { %v358_v53 = vpop.f32.mrb[2].mxu0 }
 0x101   : > { %v359_v54 = vadd.f32 %v564_v48, %v358_v53  ;;  %v644_v55 = vpop.f32.mrb[3].mxu0  ;;  %681 = vmatmul.mubr.f32.vlgmr.msra.gmra.mrb[0].mxu1 %v367_v52 }
 0x102   : > { %683 = vmatprep.mubr.msk.f32.mxu1 %vm840_vm0, %v841_v6 }
 0x103   : > { %v368_v56 = vmax.f32 %v359_v54, 0.0 }
 0x104   : > { %v363_v57 = vpop.f32.mrb[4].mxu0 }
 0x105   : > { %v364_v58 = vadd.f32 %v564_v48, %v363_v57  ;;  %v647_v59 = vpop.f32.mrb[5].mxu0  ;;  %684 = vmatmul.mubr.f32.gmra.mrb[2].mxu1 %v368_v56 }
 0x106   : > { %686 = vmatprep.mubr.msk.f32.mxu1 %vm840_vm0, %v841_v6 }
 0x107   : > { %v369_v60 = vmax.f32 %v364_v58, 0.0 }
 0x109   : > { %687 = vmatmul.mubr.f32.gmra.mrb[4].mxu1 %v369_v60 }
 0x1d4   : > { %v459_v62 = vpop.f32.mrb[0].mxu1 }
 0x1d5   : > { %v460_v63 = vadd.f32 %v569_v61, %v459_v62  ;;  %v682_v0 = vpop.f32.mrb[1].mxu1 }
 0x1d7   : > { %474 = vst.msk [vmem:[%s230_s14] sm:$0xff] %vm473_vm3, %v460_v63 }
 0x1d8   : > { %v464_v1 = vpop.f32.mrb[2].mxu1 }
 0x1d9   : > { %v465_v2 = vadd.f32 %v569_v61, %v464_v1  ;;  %v685_v3 = vpop.f32.mrb[3].mxu1  ;;  %484 = sbr.rel (!%p913_p5) target bundleno = 508 (0x1fc), region = 44 }
 0x1db   : > { %475 = vst.msk [vmem:[%s230_s14 + $0x8] sm:$0xff] %vm473_vm3, %v465_v2 }
 0x1dc   : > { %v469_v4 = vpop.f32.mrb[4].mxu1 }
 0x1dd   : > { %v470_v5 = vadd.f32 %v569_v61, %v469_v4  ;;  %v688_v6 = vpop.f32.mrb[5].mxu1 }
 0x1df   : > { %476 = vst.msk [vmem:[%s230_s14 + $0x10] sm:$0xff] %vm473_vm3, %v470_v5 }
 0x1e0   : > { %s1125_s16 = smov (!%p487_p11, %s486_s16), 3 }
 0x1e1   : > { %s1057_s17 = sshll.u32 %s1125_s16, 7 }
 0x1e2   : > { %s491_s23 = ssub.s32 384, %s1057_s17 }
 0x1e3   : > { %492 = vsyncadd %s1052_s15, %s491_s23  ;;  %p571_p12 = scmp.ne.s32.totalorder %s1057_s17, 0  ;;  %s577_s25 = smul.u32 384, %s896_s22 }
 0x1e4   : > { %s497_s26 = sshll.u32 %s230_s14, 4  ;;  %s842_s7 = smov [#allocation2]   ;;  %s1068_s26 = int_to_ptr.vmem [resolvable:$true] %s497_s26 }
 0x1e5   : > { %s1066_s6 = scalar_lea.hbm %s1117_s5, %s577_s25  ;;  %s775_s11 = scalar_lea.vmem %s1068_s26, %s1057_s17 }
 0x1e6   : > { %p776_p13 = scmp.ne.s32.totalorder %s1068_s26, %s775_s11  ;;  %s779_s8 = sshll.u32 %s842_s7, 4  ;;  %s780_s8 = int_to_ptr.vmem [resolvable:$false] %s779_s8 }
 0x1e7   : > { %s781_s22 = scalar_lea.vmem %s780_s8, 768  ;;  %p782_p2 = scmp.lt.s32.totalorder %s1068_s26, %s780_s8 }
 0x1e8   : > { %p777_p0 = pnand %p776_p13, %p571_p12  ;;  %p783_p3 = scmp.lt.s32.totalorder %s781_s22, %s775_s11 }
 0x1ea   : > { %p778_p1 = pneg %p777_p0  ;;  %p784_p4 = por %p783_p3, %p782_p2 }
 0x1ec   : > { %p785_p5 = pnand %p784_p4, %p778_p1 }
 0x1ee   : > { %788 = shalt.err (!%p785_p5)
}
 0x1ef   : > { %s789_s9 = scalar_lea.hbm %s1066_s6, %s1057_s17  ;;  %s793_s13 = scalar_lea.hbm %s1117_s5, 640 }
 0x1f0   : > { %p790_p7 = scmp.ne.s32.totalorder %s1066_s6, %s789_s9  ;;  %p794_p10 = scmp.lt.u32.totalorder %s1066_s6, %s1117_s5 }
 0x1f1   : > { %p795_p11 = scmp.lt.u32.totalorder %s793_s13, %s789_s9  ;;  %p797_p0 = scmp.lt.u32.totalorder %s789_s9, %s1066_s6 }
 0x1f2   : > { %p791_p8 = pnand %p790_p7, %p571_p12 }
 0x1f3   : > { %p796_p13 = por %p795_p11, %p794_p10 }
 0x1f4   : > { %p792_p9 = pneg %p791_p8 }
 0x1f5   : > { %p798_p1 = por %p797_p0, %p796_p13 }
 0x1f7   : > { %p799_p2 = pnand %p798_p1, %p792_p9 }
 0x1f9   : > { %802 = shalt.err (!%p799_p2)
}
 0x1fa   : > { %s843_s23 = smov 128   ;;  %s844_s25 = smov 8  }
 0x1fb   : > { %503 = dma.vmem_to_hbm [thread:$0]  (%p571_p12), %s1068_s26, %s1057_s17, %s1066_s6, %s1052_s15, %s843_s23, %s843_s23, %s844_s25  }
 0x1fc PF: > { %p737_p3 = scmp.ge.s32.totalorder %s837_s21, 2  ;;  %s512_s30 = sand.u32 1, %s825_s18  }
 0x1fd   : > { %s513_s28 = scalar_lea.sflag [#allocation3], %s512_s30 }
 0x1fe   : > { %p734_p4 = pnand %p737_p3, %p917_p6 }
 0x200   : > { %820 = dma.done.wait (!%p734_p4), %s513_s28, 384  }
 0x201   : > { %822 = vsyncadd (!%p734_p4), %s513_s28, 4294966912  ;;  %p15_p5 = scmp.ge.s32.totalorder %s900_s24, 4   ;;  %s1120_s18 = smov %s829_s19 }
 0x202   : > { %s1121_s19 = smov %s833_s20  ;;  %s1122_s20 = smov %s911_s27 }
 0x203   : > { %s1123_s21 = smov %s900_s24  ;;  %17 = sbr.rel (!%p15_p5) target bundleno = 3 (0x3), region = 75 }
 0x20a   :  { %518 = vsyncpa [#allocation3], 1 }
 0x20b   :  { %520 = vsyncpa [#allocation3 + $0x1], 1 }

</bundles_post_ra>
